<compile_context>
chip_gen: v7x
topology: tpu7x:2x2x1
jax: 0.10.0
libtpu: 0.0.40
codegen_flags: <defaults>
</compile_context>

<pallas_src>
import jax
import jax.numpy as jnp
from jax.experimental import pallas as pl
from jax.experimental.pallas import tpu as pltpu


def _corner_add_kernel(x_ref, patch_ref, o_ref):
    # x_ref / o_ref: (1, C, Rb, Lb) window over the top-left corner of one batch
    # item's planes; patch_ref: (1, C, Rb, Lb) zero-padded patch. One full-tile add.
    o_ref[...] = x_ref[...] + patch_ref[...]


def _round_up(v, m):
    return ((v + m - 1) // m) * m


def fixed_patch_prompter(x, patch):
    """x: (B, C, H, W), patch: (1, C, P, P) -> (B, C, H, W) == x + corner prompt."""
    B, C, H, W = x.shape
    pb, Cp, P, Pw = patch.shape
    assert pb == 1 and Cp == C and P == Pw
    if P > H or P > W:
        # PyTorch's prompt[:, :, :P, :P] = patch would raise on shape mismatch.
        raise ValueError("prompt_size must be <= image_size")

    # Sublane/lane-aligned corner window fully containing the P x P patch.
    # Rows: multiple of 8 (or the full H); lanes: multiple of 128 (or the full W),
    # so block shapes are always legal and output stores stay unmasked.
    r8 = _round_up(P, 8)
    Rb = H if r8 >= H else r8
    l128 = _round_up(P, 128)
    Lb = W if l128 >= W else l128

    # Tiny zero-padded patch block (O(C*Rb*Lb) bytes, built wrapper-side).
    patch_blk = jnp.zeros((1, C, Rb, Lb), dtype=x.dtype)
    patch_blk = patch_blk.at[:, :, :P, :P].set(patch.astype(x.dtype))

    blk = (1, C, Rb, Lb)
    out = pl.pallas_call(
        _corner_add_kernel,
        out_shape=jax.ShapeDtypeStruct(x.shape, x.dtype),
        grid=(B,),
        in_specs=[
            pl.BlockSpec(blk, lambda b: (b, 0, 0, 0)),  # corner block of batch item b
            pl.BlockSpec(blk, lambda b: (0, 0, 0, 0)),  # padded patch (stays resident)
        ],
        out_specs=pl.BlockSpec(blk, lambda b: (b, 0, 0, 0)),
        # Output buffer IS x: only the corner blocks above get rewritten; every
        # untouched block keeps x's original values.
        input_output_aliases={0: 0},
        compiler_params=pltpu.CompilerParams(
            dimension_semantics=("parallel",),
            vmem_limit_bytes=32 << 20,
        ),
    )(x, patch_blk)
    return out


if __name__ == "__main__":
    # Module-consistent small shapes: args.image_size=16, args.prompt_size=4,
    # fixed 3 channels (hardwired in the PyTorch module), batch=2.
    B, C, ISIZE, PSIZE = 2, 3, 16, 4

    key = jax.random.PRNGKey(0)
    kx, kp = jax.random.split(key)
    x = jax.random.normal(kx, (B, C, ISIZE, ISIZE), dtype=jnp.float32)
    # Deterministic stand-in for nn.Parameter(torch.randn([1, 3, P, P])).
    patch = jax.random.normal(kp, (1, C, PSIZE, PSIZE), dtype=jnp.float32)

    out = jax.block_until_ready(fixed_patch_prompter(x, patch))

    # Pure-JAX reference (exact PyTorch semantics).
    ref_prompt = jnp.zeros((1, C, ISIZE, ISIZE), dtype=jnp.float32)
    ref_prompt = ref_prompt.at[:, :, :PSIZE, :PSIZE].set(patch)
    ref = x + ref_prompt

    assert out.shape == x.shape and out.dtype == x.dtype
    assert jnp.allclose(out, ref, atol=1e-6, rtol=1e-6)
    print("KERNEL_OK")
</pallas_src>

<mosaic_0001>
module attributes {stable_mosaic.version = 11 : i64} {
  func.func @_corner_add_kernel(%arg0: i32, %arg1: memref<1x3x8x16xf32, #tpu.memory_space<vmem>>, %arg2: memref<1x3x8x16xf32, #tpu.memory_space<vmem>>, %arg3: memref<1x3x8x16xf32, #tpu.memory_space<vmem>>) attributes {dimension_semantics = [#tpu.dimension_semantics<parallel>], iteration_bounds = array<i64: 2>, scalar_prefetch = 0 : i64, scratch_operands = 0 : i64, tpu.core_type = #tpu.core_type<tc>, window_params = [{transform_indices = @transform_0, window_bounds = array<i64: 1, 3, 8, 16>}, {pipeline_mode = #tpu.pipeline_mode<synchronous>, transform_indices = @transform_1, window_bounds = array<i64: 1, 3, 8, 16>}, {transform_indices = @transform_2, window_bounds = array<i64: 1, 3, 8, 16>}]} {
    %c0 = arith.constant 0 : index
    %c0_0 = arith.constant 0 : index
    %c0_1 = arith.constant 0 : index
    %c0_2 = arith.constant 0 : index
    %0 = vector.load %arg1[%c0, %c0_0, %c0_1, %c0_2] : memref<1x3x8x16xf32, #tpu.memory_space<vmem>>, vector<1x3x8x16xf32>
    %c0_3 = arith.constant 0 : index
    %c0_4 = arith.constant 0 : index
    %c0_5 = arith.constant 0 : index
    %c0_6 = arith.constant 0 : index
    %1 = vector.load %arg2[%c0_3, %c0_4, %c0_5, %c0_6] : memref<1x3x8x16xf32, #tpu.memory_space<vmem>>, vector<1x3x8x16xf32>
    %2 = arith.addf %0, %1 : vector<1x3x8x16xf32>
    %c0_7 = arith.constant 0 : index
    %c0_8 = arith.constant 0 : index
    %c0_9 = arith.constant 0 : index
    %c0_10 = arith.constant 0 : index
    %3 = vector.load %arg3[%c0_7, %c0_8, %c0_9, %c0_10] : memref<1x3x8x16xf32, #tpu.memory_space<vmem>>, vector<1x3x8x16xf32>
    tpu.vector_store %arg3[%c0_7, %c0_8, %c0_9, %c0_10], %2 {strides = array<i32>} : memref<1x3x8x16xf32, #tpu.memory_space<vmem>>, vector<1x3x8x16xf32>,
    return
  }
  func.func @transform_0(%arg0: i32) -> (i32, i32, i32, i32) {
    %c0_i32 = arith.constant 0 : i32
    %c0_i32_0 = arith.constant 0 : i32
    %c0_i32_1 = arith.constant 0 : i32
    %c0_i32_2 = arith.constant 0 : i32
    return %arg0, %c0_i32, %c0_i32_0, %c0_i32_1 : i32, i32, i32, i32
  }
  func.func @transform_1(%arg0: i32) -> (i32, i32, i32, i32) {
    %c0_i32 = arith.constant 0 : i32
    %c0_i32_0 = arith.constant 0 : i32
    %c0_i32_1 = arith.constant 0 : i32
    %c0_i32_2 = arith.constant 0 : i32
    %c0_i32_3 = arith.constant 0 : i32
    return %c0_i32, %c0_i32_0, %c0_i32_1, %c0_i32_2 : i32, i32, i32, i32
  }
  func.func @transform_2(%arg0: i32) -> (i32, i32, i32, i32) {
    %c0_i32 = arith.constant 0 : i32
    %c0_i32_0 = arith.constant 0 : i32
    %c0_i32_1 = arith.constant 0 : i32
    %c0_i32_2 = arith.constant 0 : i32
    return %arg0, %c0_i32, %c0_i32_0, %c0_i32_1 : i32, i32, i32, i32
  }
}

</mosaic_0001>

<bundles_post_ra>
// kernel: tpu_custom_call.1
= control target key start
LH: loop header
LB: loop body
LE: loop exit
PB: predicated region body
PF: predicated region fallthrough
CT: control target
= control target key end

     0   :  { %7 = vsyncpa [#allocation3], 0  ;;  %s614_s0 = inlined_call_operand.hbm [shape: f32[2,3,16,16], index: 0, kind: input, shape index: {}, may-alias: {0,2}]   ;;  %s615_s1 = inlined_call_operand.vmem [shape: f32[1,3,8,16], index: 1, kind: input, shape index: {}]   ;;  %s616_s2 = inlined_call_operand.hbm [shape: f32[2,3,16,16], index: 2, kind: output, shape index: {}, may-alias: {0,2}]  }
   0x1   :  { %9 = vsyncpa [#allocation3 + $0x1], 0 }
   0x2   :  { %10 = vsyncpa [#allocation4], 0 }
   0x3   :  { %12 = vsyncpa [#allocation4 + $0x1], 0  ;;  %s447_s9 = smov 0   ;;  %s449_s10 = smov 0  }
   0x4   :  { %s451_s11 = smov 0   ;;  %s453_s12 = smov 0  }
   0x5 LB: > { %s468_s13 = sadd.s32 4294967295, %s422_s12   ;;  %s262_s14 = sadd.s32 4294967294, %s422_s12   ;;  %s422_s12 = sphi %s453_s12, %s629_s12   ;;  %s418_s11 = sphi %s451_s11, %s628_s11   ;;  %s414_s10 = sphi %s449_s10, %s627_s10   ;;  %s410_s9 = sphi %s447_s9, %s626_s9  }
   0x6   : > { %s472_s15 = sadd.s32 1, %s422_s12   ;;  %s25_s16 = sadd.s32 1, %s418_s11 }
   0x7   : > { %s22_s17 = ssub.s32 %s422_s12, %s472_s15  ;;  %p32_p0 = scmp.ne.s32.totalorder %s418_s11, %s414_s10 }
   0x8   : > { %p23_p1 = scmp.eq.s32.totalorder %s22_s17, 0  ;;  %p33_p2 = scmp.eq.s32.totalorder %s422_s12, 0 }
   0x9   : > { %p38_p3 = scmp.ne.s32.totalorder %s414_s10, %s410_s9  ;;  %p39_p4 = scmp.eq.s32.totalorder %s468_s13, 0 }
   0xa   : > { %s484_s18 = scalar_select %p23_p1, %s418_s11, %s25_s16  }
   0xb   : > { %p34_p5 = por %p33_p2, %p32_p0  ;;  %p486_p6 = por %p39_p4, %p38_p3 }
   0xc   : > { %p83_p7 = scmp.eq.s32.totalorder %s468_s13, 1  ;;  %p89_p8 = scmp.eq.s32.totalorder %s262_s14, 1 }
   0xd   : > { %p286_p10 = scmp.lt.s32.totalorder %s422_s12, 2  ;;  %s112_s22 = sand.u32 1, %s418_s11  }
   0xe   : > { %p493_p11 = por %p83_p7, %p32_p0  ;;  %p497_p12 = por %p89_p8, %p38_p3 }
   0xf   : > { %s271_s23 = smul.u32 768, %s422_s12  ;;  %p508_p13 = pnand %p286_p10, %p34_p5 }
  0x10   : > { %s619_s20 = scalar_select %p493_p11, 1, 0 }
  0x11   : > { %s620_s21 = scalar_select %p497_p12, 1, 0 }
  0x12   : > { %s270_s24 = smul.u32 24, %s112_s22  ;;  %s506_s27 = scalar_lea.hbm %s614_s0, %s271_s23 }
  0x13   : > { %s515_s3 = scalar_lea.sflag [#allocation3], %s112_s22  ;;  %s326_s4 = scalar_lea.hbm %s506_s27, 384 }
  0x14   : > { %s116_s29 = scalar_lea.vmem [#allocation2], %s270_s24  ;;  %p327_p1 = scmp.ne.s32.totalorder %s506_s27, %s326_s4 }
  0x15   : > { %s123_s30 = sshll.u32 %s116_s29, 4  ;;  %p328_p2 = pneg %p508_p13  ;;  %s512_s30 = int_to_ptr.vmem [resolvable:$true] %s123_s30 }
  0x16   : > { %s331_s7 = scalar_lea.hbm %s614_s0, 1536  ;;  %p332_p5 = scmp.lt.u32.totalorder %s506_s27, %s614_s0 }
  0x17   : > { %p329_p3 = pnand %p328_p2, %p327_p1  ;;  %p333_p7 = scmp.lt.u32.totalorder %s331_s7, %s326_s4 }
  0x18   : > { %p335_p10 = scmp.lt.u32.totalorder %s326_s4, %s506_s27 }
  0x19   : > { %p330_p4 = pneg %p329_p3  ;;  %p334_p8 = por %p333_p7, %p332_p5 }
  0x1b   : > { %p336_p9 = por %p335_p10, %p334_p8 }
  0x1d   : > { %p337_p0 = pnand %p336_p9, %p330_p4 }
  0x1f   : > { %340 = shalt.err (!%p337_p0)
}
  0x20   : > { %s341_s16 = scalar_lea.vmem %s512_s30, 384  ;;  %s424_s17 = smov [#allocation2]  }
  0x21   : > { %p342_p1 = scmp.ne.s32.totalorder %s512_s30, %s341_s16  ;;  %s346_s22 = sshll.u32 %s424_s17, 4  ;;  %s347_s22 = int_to_ptr.vmem [resolvable:$false] %s346_s22 }
  0x22   : > { %s348_s23 = scalar_lea.vmem %s347_s22, 768  ;;  %p349_p11 = scmp.lt.s32.totalorder %s512_s30, %s347_s22 }
  0x23   : > { %p344_p3 = pnand %p342_p1, %p328_p2  ;;  %p350_p5 = scmp.lt.s32.totalorder %s348_s23, %s341_s16 }
  0x25   : > { %p345_p12 = pneg %p344_p3  ;;  %p351_p7 = por %p350_p5, %p349_p11 }
  0x27   : > { %p352_p8 = pnand %p351_p7, %p345_p12 }
  0x29   : > { %355 = shalt.err (!%p352_p8)
}
  0x2a   : > { %s425_s24 = smov 256   ;;  %s426_s25 = smov 128  }
  0x2b   : > { %s427_s26 = smov 8   ;;  %p131_p9 = scmp.lt.s32.totalorder %s422_s12, 3 }
  0x2c   : > { %281 = dma.hbm_to_vmem [thread:$0]  (!%p508_p13), %s506_s27, 384, %s512_s30, %s515_s3, %s425_s24, %s426_s25, %s427_s26  }
  0x2d   : > { %p622_p0 = scmp.ge.s32.totalorder %s422_s12, 1 }
  0x2f   : > { %p132_p2 = pnand %p622_p0, %p131_p9 }
  0x30   : > { %s547_s29 = sand.u32 (!%p132_p2), 1, %s414_s10  }
  0x31   : > { %135 = sbr.rel (%p132_p2) target bundleno = 85 (0x55), region = 28  ;;  %s138_s5 = scalar_lea.sflag (!%p132_p2), [#allocation3], %s547_s29 }
  0x32   : > { %s272_s4 = smul.u32 (!%p132_p2), 24, %s547_s29 }
  0x34   : > { %s141_s6 = scalar_lea.vmem (!%p132_p2), [#allocation2], %s272_s4 }
  0x38   : > { %401 = dma.done.wait (%p486_p6), %s138_s5, 384  }
  0x39   : > { %403 = vsyncadd (%p486_p6), %s138_s5, 4294966912  ;;  %s161_s27 = scalar_lea.vmem [#allocation5], %s272_s4  ;;  %s273_s30 = smul.u32 768, %s468_s13  ;;  %v162_v0 = vld [vmem:[%s141_s6] sm:$0xff]  ;;  %vm171_vm0 = vcmask 130048   ;;  %v163_v2 = vld [vmem:[%s141_s6 + $0x8] sm:$0xff] }
  0x3a   : > { %s189_s28 = sshll.u32 %s161_s27, 4  ;;  %v165_v1 = vld [vmem:[%s615_s1] sm:$0xff]  ;;  %v166_v4 = vld [vmem:[%s615_s1 + $0x8] sm:$0xff]  ;;  %v167_v6 = vld [vmem:[%s615_s1 + $0x10] sm:$0xff]  ;;  %s176_s23 = scalar_lea.sflag [#allocation4], %s547_s29  ;;  %s559_s28 = int_to_ptr.vmem [resolvable:$true] %s189_s28 }
  0x3b   : > { %v168_v3 = vadd.f32 %v165_v1, %v162_v0  ;;  %v164_v5 = vld [vmem:[%s141_s6 + $0x10] sm:$0xff]  ;;  %s570_s22 = scalar_lea.hbm %s616_s2, %s273_s30  ;;  %v169_v7 = vadd.f32 %v166_v4, %v163_v2  ;;  %s356_s24 = scalar_lea.vmem %s559_s28, 384 }
  0x3c   : > { %v170_v8 = vadd.f32 %v167_v6, %v164_v5  ;;  %p357_p6 = scmp.ne.s32.totalorder %s559_s28, %s356_s24  ;;  %p623_p11 = scmp.ne.s32.totalorder %s619_s20, 0 }
  0x3d   : > { %172 = vst.msk [vmem:[%s161_s27] sm:$0xff] %vm171_vm0, %v168_v3  ;;  %173 = vst.msk [vmem:[%s161_s27 + $0x8] sm:$0xff] %vm171_vm0, %v169_v7  ;;  %s428_s25 = smov [#allocation5]  }
  0x3e   : > { %174 = vst.msk [vmem:[%s161_s27 + $0x10] sm:$0xff] %vm171_vm0, %v170_v8  ;;  %p358_p12 = pnand %p357_p6, %p623_p11  ;;  %s360_s26 = sshll.u32 %s428_s25, 4  ;;  %s361_s26 = int_to_ptr.vmem [resolvable:$false] %s360_s26 }
  0x3f   : > { %s362_s4 = scalar_lea.vmem %s361_s26, 768  ;;  %p363_p4 = scmp.lt.s32.totalorder %s559_s28, %s361_s26 }
  0x40   : > { %p359_p13 = pneg %p358_p12  ;;  %p364_p10 = scmp.lt.s32.totalorder %s362_s4, %s356_s24 }
  0x42   : > { %p365_p1 = por %p364_p10, %p363_p4 }
  0x44   : > { %p366_p3 = pnand %p365_p1, %p359_p13 }
  0x46   : > { %369 = shalt.err (!%p366_p3)
}
  0x47   : > { %s370_s5 = scalar_lea.hbm %s570_s22, 384  ;;  %s374_s30 = scalar_lea.hbm %s616_s2, 1536 }
  0x48   : > { %p371_p5 = scmp.ne.s32.totalorder %s570_s22, %s370_s5  ;;  %p375_p9 = scmp.lt.u32.totalorder %s570_s22, %s616_s2 }
  0x49   : > { %p376_p0 = scmp.lt.u32.totalorder %s374_s30, %s370_s5  ;;  %p378_p6 = scmp.lt.u32.totalorder %s370_s5, %s570_s22 }
  0x4a   : > { %p372_p7 = pnand %p371_p5, %p623_p11 }
  0x4b   : > { %p377_p2 = por %p376_p0, %p375_p9 }
  0x4c   : > { %p373_p8 = pneg %p372_p7 }
  0x4d   : > { %p379_p12 = por %p378_p6, %p377_p2 }
  0x4f   : > { %p380_p13 = pnand %p379_p12, %p373_p8 }
  0x51   : > { %383 = shalt.err (!%p380_p13)
}
  0x52   : > { %s429_s19 = smov 128   ;;  %s430_s8 = smov 256  }
  0x53   : > { %s431_s13 = smov 8  }
  0x54   : > { %276 = dma.vmem_to_hbm [thread:$0]  (%p623_p11), %s559_s28, 384, %s570_s22, %s176_s23, %s429_s19, %s430_s8, %s431_s13  }
  0x55 PF: > { %s204_s14 = sand.u32 1, %s410_s9   ;;  %p624_p4 = scmp.ne.s32.totalorder %s620_s21, 0 }
  0x56   : > { %p625_p10 = scmp.ge.s32.totalorder %s422_s12, 2  ;;  %s205_s16 = scalar_lea.sflag [#allocation4], %s204_s14 }
  0x58   : > { %p283_p1 = pnand %p625_p10, %p624_p4 }
  0x5a   : > { %405 = dma.done.wait (!%p283_p1), %s205_s16, 384  }
  0x5b   : > { %407 = vsyncadd (!%p283_p1), %s205_s16, 4294966912  ;;  %p15_p3 = scmp.ge.s32.totalorder %s472_s15, 4   ;;  %s626_s9 = smov %s414_s10 }
  0x5c   : > { %s627_s10 = smov %s418_s11  ;;  %s628_s11 = smov %s484_s18 }
  0x5d   : > { %s629_s12 = smov %s472_s15  ;;  %17 = sbr.rel (!%p15_p3) target bundleno = 5 (0x5), region = 73 }
  0x64   :  { %210 = vsyncpa [#allocation3], 1 }
  0x65   :  { %212 = vsyncpa [#allocation3 + $0x1], 1 }
  0x66   :  { %213 = vsyncpa [#allocation4], 1 }
  0x67   :  { %215 = vsyncpa [#allocation4 + $0x1], 1 }

</bundles_post_ra>
